<compile_context>
chip_gen: v6e
topology: v6e:2x2x1
jax: 0.10.0
libtpu: 0.0.40
codegen_flags: <defaults>
</compile_context>

<pallas_src>
import math

import jax
import jax.numpy as jnp
from jax.experimental import pallas as pl
from jax.experimental.pallas import tpu as pltpu

LANE = 128                      # TPU lane width; tiny head outputs are packed
N_TAR, N_ARG, N_GRP, N_HATE = 3, 3, 6, 2


# ----------------------------------------------------------------------------
# Fused Pallas kernel (one grid step == one batch element)
# ----------------------------------------------------------------------------
def _layernorm(x, gamma, beta, eps=1e-12):
    mu = jnp.mean(x, axis=-1, keepdims=True)
    var = jnp.mean((x - mu) ** 2, axis=-1, keepdims=True)
    return (x - mu) * jax.lax.rsqrt(var + eps) * gamma + beta


def fused_forward_kernel(x_ref, mask_ref,
                         wqkv_ref, bqkv_ref, wo_ref, bo_ref, g1_ref, b1_ref,
                         wf1_ref, bf1_ref, wf2_ref, bf2_ref, g2_ref, b2_ref,
                         wp_ref, bp_ref, wtok_ref, btok_ref, wcls_ref, bcls_ref,
                         tok_ref, cls_ref):
    """1-layer BERT-style encoder + all heads for ONE batch element.

    x_ref    : [1, S, H]   token+position embeddings (f32).
    mask_ref : [1, 1, S]   key-padding mask row (1.0 keep / 0.0 pad, f32).
    weights  : bf16 matmul weights (constant index_map -> VMEM resident);
               biases / LN params f32.
    tok_ref  : [1, S, 128] lane-dense slab; cols 0:3 tar logits, 3:6 arg.
    cls_ref  : [1, 1, 128] lane-dense slab; cols 0:6 group logits, 6:8 hate.
    """
    x = x_ref[0]                                     # [S, H] f32
    S, H = x.shape
    xb = x.astype(jnp.bfloat16)

    # ---- self-attention (Q/K/V fused; 1/sqrt(H) pre-folded into wq/bq) -----
    qkv = jnp.dot(xb, wqkv_ref[...],
                  preferred_element_type=jnp.float32) + bqkv_ref[...]
    q = qkv[:, :H]
    k = qkv[:, H:2 * H]
    v = qkv[:, 2 * H:]

    # contract axis 1 of both operands: no explicit k.T (XLU) transpose.
    scores = jax.lax.dot_general(
        q.astype(jnp.bfloat16), k.astype(jnp.bfloat16),
        dimension_numbers=(((1,), (1,)), ((), ())),
        preferred_element_type=jnp.float32)          # [S, S] f32

    # additive key-padding bias built in-kernel (f32; never add -1e9 in bf16).
    bias = jnp.where(mask_ref[0] > 0.0, 0.0, -1e9)   # [1, S]
    scores = scores + bias

    p = jnp.exp(scores - jnp.max(scores, axis=-1, keepdims=True))
    p = p / jnp.sum(p, axis=-1, keepdims=True)       # exact softmax (f32)

    ctx = jnp.dot(p.astype(jnp.bfloat16), v.astype(jnp.bfloat16),
                  preferred_element_type=jnp.float32)
    attn = jnp.dot(ctx.astype(jnp.bfloat16), wo_ref[...],
                   preferred_element_type=jnp.float32) + bo_ref[...]

    h = _layernorm(x + attn, g1_ref[...], b1_ref[...])          # f32

    # ---- feed-forward -------------------------------------------------------
    ff = jax.nn.gelu(jnp.dot(h.astype(jnp.bfloat16), wf1_ref[...],
                             preferred_element_type=jnp.float32) + bf1_ref[...])
    ff = jnp.dot(ff.astype(jnp.bfloat16), wf2_ref[...],
                 preferred_element_type=jnp.float32) + bf2_ref[...]
    seq = _layernorm(h + ff, g2_ref[...], b2_ref[...])          # [S, H] f32

    # ---- token classifiers (tar|arg packed -> one lane-dense 128-wide store)
    tok_ref[0] = jnp.dot(seq.astype(jnp.bfloat16), wtok_ref[...],
                         preferred_element_type=jnp.float32) + btok_ref[...]

    # ---- pooler + sequence classifiers (CLS == row 0 of this batch block) --
    cls_tok = seq[0:1, :]                                        # [1, H]
    pooled = jnp.tanh(jnp.dot(cls_tok.astype(jnp.bfloat16), wp_ref[...],
                              preferred_element_type=jnp.float32) + bp_ref[...])
    cls_ref[0] = jnp.dot(pooled.astype(jnp.bfloat16), wcls_ref[...],
                         preferred_element_type=jnp.float32) + bcls_ref[...]


# ----------------------------------------------------------------------------
# pallas_call wrapper
# ----------------------------------------------------------------------------
def _pack_kernel_operands(p):
    """Fuse Q/K/V (with the attention scale folded into Q), pack the tiny
    classifier heads into lane-dense weights, and cast matmul weights to bf16
    (biases / LN params stay f32 for f32 accumulation + elementwise math)."""
    H = p["wq"].shape[0]
    scale = 1.0 / math.sqrt(H)
    wqkv = jnp.concatenate([p["wq"] * scale, p["wk"], p["wv"]],
                           axis=1).astype(jnp.bfloat16)             # [H, 3H]
    bqkv = jnp.concatenate([p["bq"] * scale, p["bk"], p["bv"]], axis=1)  # f32
    wtok = (jnp.zeros((H, LANE), jnp.float32)
            .at[:, :N_TAR].set(p["wt"])
            .at[:, N_TAR:N_TAR + N_ARG].set(p["wa"])).astype(jnp.bfloat16)
    btok = (jnp.zeros((1, LANE), jnp.float32)
            .at[:, :N_TAR].set(p["bt"])
            .at[:, N_TAR:N_TAR + N_ARG].set(p["ba"]))
    wcls = (jnp.zeros((H, LANE), jnp.float32)
            .at[:, :N_GRP].set(p["wg"])
            .at[:, N_GRP:N_GRP + N_HATE].set(p["wh"])).astype(jnp.bfloat16)
    bcls = (jnp.zeros((1, LANE), jnp.float32)
            .at[:, :N_GRP].set(p["bg"])
            .at[:, N_GRP:N_GRP + N_HATE].set(p["bh"]))
    return [wqkv, bqkv,
            p["wo"].astype(jnp.bfloat16), p["bo"], p["ln1_g"], p["ln1_b"],
            p["wf1"].astype(jnp.bfloat16), p["bf1"],
            p["wf2"].astype(jnp.bfloat16), p["bf2"], p["ln2_g"], p["ln2_b"],
            p["wp"].astype(jnp.bfloat16), p["bp"],
            wtok, btok, wcls, bcls]


def run_fused_forward(params, input_ids, attention_mask):
    B, S = input_ids.shape
    H = params["emb"].shape[1]

    # glue: embedding gather + position embedding, [B, S, H] f32
    x = (params["emb"][input_ids] + params["pos"][None, :S, :]) \
        .astype(jnp.float32)
    # key-padding mask row per batch, [B, 1, S] f32 (bias built in-kernel)
    mask = attention_mask.astype(jnp.float32).reshape(B, 1, S)

    operands = _pack_kernel_operands(params)

    # per-batch activation/output blocks; constant-index weight blocks stay
    # VMEM-resident across grid steps (no per-step weight re-DMA).
    in_specs = (
        [pl.BlockSpec((1, S, H), lambda b: (b, 0, 0)),
         pl.BlockSpec((1, 1, S), lambda b: (b, 0, 0))]
        + [pl.BlockSpec(w.shape, lambda b: (0, 0)) for w in operands])
    out_specs = (pl.BlockSpec((1, S, LANE), lambda b: (b, 0, 0)),
                 pl.BlockSpec((1, 1, LANE), lambda b: (b, 0, 0)))

    tok_slab, cls_slab = pl.pallas_call(
        fused_forward_kernel,
        grid=(B,),
        in_specs=in_specs,
        out_specs=out_specs,
        out_shape=(jax.ShapeDtypeStruct((B, S, LANE), jnp.float32),
                   jax.ShapeDtypeStruct((B, 1, LANE), jnp.float32)),
        compiler_params=pltpu.CompilerParams(
            dimension_semantics=("parallel",)),
    )(x, mask, *operands)

    tar_logits = tok_slab[:, :, :N_TAR]                       # [B, S, 3]
    arg_logits = tok_slab[:, :, N_TAR:N_TAR + N_ARG]          # [B, S, 3]
    group_logits = cls_slab[:, 0, :N_GRP]                     # [B, 6]
    hate_logits = cls_slab[:, 0, N_GRP:N_GRP + N_HATE]        # [B, 2]
    return tar_logits, arg_logits, group_logits, hate_logits


# ----------------------------------------------------------------------------
# CRF negative log-likelihood (torchcrf semantics, reduction='mean')
# Plain-JAX glue: the tag dimension (3) has no efficient TPU-tile mapping; the
# sequential recursions use lax.scan so compile time stays flat at real S.
# ----------------------------------------------------------------------------
def crf_neg_log_likelihood_mean(emissions, tags, mask, start, trans, end):
    B, S, _ = emissions.shape
    maskf = mask.astype(jnp.float32)
    bidx = jnp.arange(B)

    # numerator: score of the gold path
    score0 = start[tags[:, 0]] + emissions[bidx, 0, tags[:, 0]]

    def num_step(score, inp):
        prev_tag, cur_tag, emit, mk = inp
        step = trans[prev_tag, cur_tag] + emit[bidx, cur_tag]
        return score + step * mk, None

    num_xs = (tags[:, :-1].T, tags[:, 1:].T,
              jnp.swapaxes(emissions[:, 1:], 0, 1), maskf[:, 1:].T)
    score, _ = jax.lax.scan(num_step, score0, num_xs)
    last_idx = jnp.sum(mask.astype(jnp.int32), axis=1) - 1
    score = score + end[tags[bidx, last_idx]]

    # denominator: log partition (forward algorithm)
    alpha0 = start[None, :] + emissions[:, 0]                       # [B, T]

    def den_step(alpha, inp):
        emit, mk = inp
        nxt = jax.nn.logsumexp(alpha[:, :, None] + trans[None, :, :]
                               + emit[:, None, :], axis=1)
        return jnp.where(mk[:, None], nxt, alpha), None

    den_xs = (jnp.swapaxes(emissions[:, 1:], 0, 1),
              jnp.swapaxes(mask[:, 1:], 0, 1))
    alpha, _ = jax.lax.scan(den_step, alpha0, den_xs)
    denom = jax.nn.logsumexp(alpha + end[None, :], axis=1)

    return -jnp.mean(score - denom)


def distance_loss_fn(tar_labels, arg_labels):
    """0.1 * mean_b |mean-pos(tar>0) - mean-pos(arg>0)|.  Plain JAX: the inputs
    are 2x[B,S] int32 (~128 B); a dedicated pallas_call is launch overhead."""
    S = tar_labels.shape[1]
    pos = jnp.arange(S, dtype=jnp.float32)[None, :]
    mt = (tar_labels > 0).astype(jnp.float32)
    ma = (arg_labels > 0).astype(jnp.float32)
    tp = jnp.sum(pos * mt, axis=1) / jnp.maximum(jnp.sum(mt, axis=1), 1.0)
    ap = jnp.sum(pos * ma, axis=1) / jnp.maximum(jnp.sum(ma, axis=1), 1.0)
    return 0.1 * jnp.mean(jnp.abs(tp - ap))


# ----------------------------------------------------------------------------
# Full HateModel forward
# ----------------------------------------------------------------------------
@jax.jit
def hate_model_forward(params, input_ids, attention_mask,
                       tar_labels=None, arg_labels=None,
                       group_label=None, hate_label=None):
    tar_logits, arg_logits, group_logits, hate_logits = run_fused_forward(
        params, input_ids, attention_mask)

    tar_loss = arg_loss = distance_loss = None
    if tar_labels is not None and arg_labels is not None:
        mask_b = attention_mask.astype(bool)
        tar_loss = crf_neg_log_likelihood_mean(
            tar_logits, tar_labels, mask_b,
            params["tar_crf_start"], params["tar_crf_trans"], params["tar_crf_end"])
        arg_loss = crf_neg_log_likelihood_mean(
            arg_logits, arg_labels, mask_b,
            params["arg_crf_start"], params["arg_crf_trans"], params["arg_crf_end"])
        distance_loss = distance_loss_fn(tar_labels, arg_labels)

    return (tar_logits, arg_logits, group_logits, hate_logits,
            tar_loss, arg_loss, distance_loss)


# ----------------------------------------------------------------------------
# Deterministic parameter init (synthetic encoder + heads + CRF params)
# ----------------------------------------------------------------------------
def init_params(key, vocab=100, H=32, S=8,
                n_tar=N_TAR, n_arg=N_ARG, n_grp=N_GRP, n_hate=N_HATE):
    ks = iter(jax.random.split(key, 32))
    p = {}
    dense = lambda fi, fo: jax.random.normal(next(ks), (fi, fo), jnp.float32) * 0.02
    p["emb"] = jax.random.normal(next(ks), (vocab, H), jnp.float32) * 0.02
    p["pos"] = jax.random.normal(next(ks), (S, H), jnp.float32) * 0.02
    # encoder layer (weights stored [in, out]; biases / LN params [1, out])
    for name, shp in [("wq", (H, H)), ("wk", (H, H)), ("wv", (H, H)), ("wo", (H, H)),
                      ("wf1", (H, 4 * H)), ("wf2", (4 * H, H))]:
        p[name] = dense(*shp)
    for name, d in [("bq", H), ("bk", H), ("bv", H), ("bo", H),
                    ("bf1", 4 * H), ("bf2", H), ("ln1_b", H), ("ln2_b", H)]:
        p[name] = jnp.zeros((1, d), jnp.float32)
    p["ln1_g"] = jnp.ones((1, H), jnp.float32)
    p["ln2_g"] = jnp.ones((1, H), jnp.float32)
    # pooler + classification heads
    p["wp"], p["bp"] = dense(H, H), jnp.zeros((1, H), jnp.float32)
    p["wt"], p["bt"] = dense(H, n_tar), jnp.zeros((1, n_tar), jnp.float32)
    p["wa"], p["ba"] = dense(H, n_arg), jnp.zeros((1, n_arg), jnp.float32)
    p["wg"], p["bg"] = dense(H, n_grp), jnp.zeros((1, n_grp), jnp.float32)
    p["wh"], p["bh"] = dense(H, n_hate), jnp.zeros((1, n_hate), jnp.float32)
    # CRF params (torchcrf init: uniform(-0.1, 0.1))
    unif = lambda shp: jax.random.uniform(next(ks), shp, jnp.float32, -0.1, 0.1)
    p["tar_crf_start"], p["tar_crf_trans"], p["tar_crf_end"] = \
        unif((n_tar,)), unif((n_tar, n_tar)), unif((n_tar,))
    p["arg_crf_start"], p["arg_crf_trans"], p["arg_crf_end"] = \
        unif((n_arg,)), unif((n_arg, n_arg)), unif((n_arg,))
    return p


if __name__ == "__main__":
    B, S, H, V = 2, 8, 32, 100
    key = jax.random.PRNGKey(0)
    kp, k1, k2, k3 = jax.random.split(key, 4)

    params = init_params(kp, vocab=V, H=H, S=S)

    input_ids = jax.random.randint(k1, (B, S), 0, V, dtype=jnp.int32)
    attention_mask = jnp.array([[1, 1, 1, 1, 1, 1, 1, 1],
                                [1, 1, 1, 1, 1, 1, 0, 0]], dtype=jnp.int32)
    tar_labels = jax.random.randint(k2, (B, S), 0, 3, dtype=jnp.int32)
    arg_labels = jax.random.randint(k3, (B, S), 0, 3, dtype=jnp.int32)

    outs = hate_model_forward(params, input_ids, attention_mask,
                              tar_labels=tar_labels, arg_labels=arg_labels)
    jax.block_until_ready(outs)

    tar_logits, arg_logits, group_logits, hate_logits, tl, al, dl = outs
    assert tar_logits.shape == (B, S, N_TAR)
    assert arg_logits.shape == (B, S, N_ARG)
    assert group_logits.shape == (B, N_GRP)
    assert hate_logits.shape == (B, N_HATE)
    assert tl.shape == () and al.shape == () and dl.shape == ()
    assert all(bool(jnp.isfinite(v).all()) for v in
               (tar_logits, arg_logits, group_logits, hate_logits, tl, al, dl))
    print("KERNEL_OK")
</pallas_src>

<mosaic_0001>
module attributes {stable_mosaic.version = 11 : i64} {
  func.func @fused_forward_kernel(%arg0: i32, %arg1: memref<1x8x32xf32, #tpu.memory_space<vmem>>, %arg2: memref<1x1x8xf32, #tpu.memory_space<vmem>>, %arg3: memref<32x96xbf16, #tpu.memory_space<vmem>>, %arg4: memref<1x96xf32, #tpu.memory_space<vmem>>, %arg5: memref<32x32xbf16, #tpu.memory_space<vmem>>, %arg6: memref<1x32xf32, #tpu.memory_space<vmem>>, %arg7: memref<1x32xf32, #tpu.memory_space<vmem>>, %arg8: memref<1x32xf32, #tpu.memory_space<vmem>>, %arg9: memref<32x128xbf16, #tpu.memory_space<vmem>>, %arg10: memref<1x128xf32, #tpu.memory_space<vmem>>, %arg11: memref<128x32xbf16, #tpu.memory_space<vmem>>, %arg12: memref<1x32xf32, #tpu.memory_space<vmem>>, %arg13: memref<1x32xf32, #tpu.memory_space<vmem>>, %arg14: memref<1x32xf32, #tpu.memory_space<vmem>>, %arg15: memref<32x32xbf16, #tpu.memory_space<vmem>>, %arg16: memref<1x32xf32, #tpu.memory_space<vmem>>, %arg17: memref<32x128xbf16, #tpu.memory_space<vmem>>, %arg18: memref<1x128xf32, #tpu.memory_space<vmem>>, %arg19: memref<32x128xbf16, #tpu.memory_space<vmem>>, %arg20: memref<1x128xf32, #tpu.memory_space<vmem>>, %arg21: memref<1x8x128xf32, #tpu.memory_space<vmem>>, %arg22: memref<1x1x128xf32, #tpu.memory_space<vmem>>) attributes {dimension_semantics = [#tpu.dimension_semantics<parallel>], iteration_bounds = array<i64: 2>, scalar_prefetch = 0 : i64, scratch_operands = 0 : i64, tpu.core_type = #tpu.core_type<tc>, window_params = [{transform_indices = @transform_0, window_bounds = array<i64: 1, 8, 32>}, {transform_indices = @transform_1, window_bounds = array<i64: 1, 1, 8>}, {pipeline_mode = #tpu.pipeline_mode<synchronous>, transform_indices = @transform_2, window_bounds = array<i64: 32, 96>}, {pipeline_mode = #tpu.pipeline_mode<synchronous>, transform_indices = @transform_3, window_bounds = array<i64: 1, 96>}, {pipeline_mode = #tpu.pipeline_mode<synchronous>, transform_indices = @transform_4, window_bounds = array<i64: 32, 32>}, {pipeline_mode = #tpu.pipeline_mode<synchronous>, transform_indices = @transform_5, window_bounds = array<i64: 1, 32>}, {pipeline_mode = #tpu.pipeline_mode<synchronous>, transform_indices = @transform_6, window_bounds = array<i64: 1, 32>}, {pipeline_mode = #tpu.pipeline_mode<synchronous>, transform_indices = @transform_7, window_bounds = array<i64: 1, 32>}, {pipeline_mode = #tpu.pipeline_mode<synchronous>, transform_indices = @transform_8, window_bounds = array<i64: 32, 128>}, {pipeline_mode = #tpu.pipeline_mode<synchronous>, transform_indices = @transform_9, window_bounds = array<i64: 1, 128>}, {pipeline_mode = #tpu.pipeline_mode<synchronous>, transform_indices = @transform_10, window_bounds = array<i64: 128, 32>}, {pipeline_mode = #tpu.pipeline_mode<synchronous>, transform_indices = @transform_11, window_bounds = array<i64: 1, 32>}, {pipeline_mode = #tpu.pipeline_mode<synchronous>, transform_indices = @transform_12, window_bounds = array<i64: 1, 32>}, {pipeline_mode = #tpu.pipeline_mode<synchronous>, transform_indices = @transform_13, window_bounds = array<i64: 1, 32>}, {pipeline_mode = #tpu.pipeline_mode<synchronous>, transform_indices = @transform_14, window_bounds = array<i64: 32, 32>}, {pipeline_mode = #tpu.pipeline_mode<synchronous>, transform_indices = @transform_15, window_bounds = array<i64: 1, 32>}, {pipeline_mode = #tpu.pipeline_mode<synchronous>, transform_indices = @transform_16, window_bounds = array<i64: 32, 128>}, {pipeline_mode = #tpu.pipeline_mode<synchronous>, transform_indices = @transform_17, window_bounds = array<i64: 1, 128>}, {pipeline_mode = #tpu.pipeline_mode<synchronous>, transform_indices = @transform_18, window_bounds = array<i64: 32, 128>}, {pipeline_mode = #tpu.pipeline_mode<synchronous>, transform_indices = @transform_19, window_bounds = array<i64: 1, 128>}, {transform_indices = @transform_20, window_bounds = array<i64: 1, 8, 128>}, {transform_indices = @transform_21, window_bounds = array<i64: 1, 1, 128>}]} {
    %c0 = arith.constant 0 : index
    %c0_0 = arith.constant 0 : index
    %c0_1 = arith.constant 0 : index
    %0 = vector.load %arg1[%c0, %c0_0, %c0_1] : memref<1x8x32xf32, #tpu.memory_space<vmem>>, vector<1x8x32xf32>
    %1 = vector.shape_cast %0 : vector<1x8x32xf32> to vector<8x32xf32>
    %2 = arith.truncf %1 : vector<8x32xf32> to vector<8x32xbf16>
    %c0_2 = arith.constant 0 : index
    %c0_3 = arith.constant 0 : index
    %3 = vector.load %arg3[%c0_2, %c0_3] : memref<32x96xbf16, #tpu.memory_space<vmem>>, vector<32x96xbf16>
    %cst = arith.constant dense<0.000000e+00> : vector<8x96xf32>
    %4 = tpu.matmul %2, %3, %cst {dimension_numbers = #tpu.dot_dimension_numbers<[1], [0], [0], [1], [0, 0, 1, 1], [], []>} : vector<8x32xbf16>, vector<32x96xbf16>, vector<8x96xf32> -> vector<8x96xf32>
    %c0_4 = arith.constant 0 : index
    %c0_5 = arith.constant 0 : index
    %5 = vector.load %arg4[%c0_4, %c0_5] : memref<1x96xf32, #tpu.memory_space<vmem>>, vector<1x96xf32>
    %6 = vector.broadcast %5 : vector<1x96xf32> to vector<8x96xf32>
    %7 = arith.addf %4, %6 : vector<8x96xf32>
    %8 = vector.extract_strided_slice %7 {offsets = [0, 0], sizes = [8, 32], strides = [1, 1]} : vector<8x96xf32> to vector<8x32xf32>
    %9 = vector.extract_strided_slice %7 {offsets = [0, 32], sizes = [8, 32], strides = [1, 1]} : vector<8x96xf32> to vector<8x32xf32>
    %10 = vector.extract_strided_slice %7 {offsets = [0, 64], sizes = [8, 32], strides = [1, 1]} : vector<8x96xf32> to vector<8x32xf32>
    %11 = arith.truncf %8 : vector<8x32xf32> to vector<8x32xbf16>
    %12 = arith.truncf %9 : vector<8x32xf32> to vector<8x32xbf16>
    %cst_6 = arith.constant dense<0.000000e+00> : vector<8x8xf32>
    %13 = tpu.matmul %11, %12, %cst_6 {dimension_numbers = #tpu.dot_dimension_numbers<[1], [1], [0], [0], [0, 0, 1, 0], [], []>} : vector<8x32xbf16>, vector<8x32xbf16>, vector<8x8xf32> -> vector<8x8xf32>
    %c0_7 = arith.constant 0 : index
    %c0_8 = arith.constant 0 : index
    %c0_9 = arith.constant 0 : index
    %14 = vector.load %arg2[%c0_7, %c0_8, %c0_9] : memref<1x1x8xf32, #tpu.memory_space<vmem>>, vector<1x1x8xf32>
    %15 = vector.shape_cast %14 : vector<1x1x8xf32> to vector<1x8xf32>
    %cst_10 = arith.constant 0.000000e+00 : f32
    %16 = vector.broadcast %cst_10 : f32 to vector<1x8xf32>
    %17 = arith.cmpf ogt, %15, %16 : vector<1x8xf32>
    %cst_11 = arith.constant 0.000000e+00 : f32
    %cst_12 = arith.constant -1.000000e+09 : f32
    %18 = vector.broadcast %cst_11 : f32 to vector<1x8xf32>
    %19 = vector.broadcast %cst_12 : f32 to vector<1x8xf32>
    %20 = arith.select %17, %18, %19 : vector<1x8xi1>, vector<1x8xf32>
    %21 = vector.broadcast %20 : vector<1x8xf32> to vector<8x8xf32>
    %22 = arith.addf %13, %21 : vector<8x8xf32>
    %cst_13 = arith.constant dense<0xFF800000> : vector<8xf32>
    %23 = vector.multi_reduction <maximumf>, %22, %cst_13 [1] : vector<8x8xf32> to vector<8xf32>
    %24 = vector.shape_cast %23 : vector<8xf32> to vector<8x1xf32>
    %25 = vector.broadcast %24 : vector<8x1xf32> to vector<8x8xf32>
    %26 = arith.subf %22, %25 : vector<8x8xf32>
    %27 = math.exp %26 : vector<8x8xf32>
    %cst_14 = arith.constant dense<0.000000e+00> : vector<8xf32>
    %28 = vector.multi_reduction <add>, %27, %cst_14 [1] : vector<8x8xf32> to vector<8xf32>
    %29 = vector.shape_cast %28 : vector<8xf32> to vector<8x1xf32>
    %30 = vector.broadcast %29 : vector<8x1xf32> to vector<8x8xf32>
    %31 = arith.divf %27, %30 : vector<8x8xf32>
    %32 = arith.truncf %31 : vector<8x8xf32> to vector<8x8xbf16>
    %33 = arith.truncf %10 : vector<8x32xf32> to vector<8x32xbf16>
    %cst_15 = arith.constant dense<0.000000e+00> : vector<8x32xf32>
    %34 = tpu.matmul %32, %33, %cst_15 {dimension_numbers = #tpu.dot_dimension_numbers<[1], [0], [0], [1], [0, 0, 1, 1], [], []>} : vector<8x8xbf16>, vector<8x32xbf16>, vector<8x32xf32> -> vector<8x32xf32>
    %35 = arith.truncf %34 : vector<8x32xf32> to vector<8x32xbf16>
    %c0_16 = arith.constant 0 : index
    %c0_17 = arith.constant 0 : index
    %36 = vector.load %arg5[%c0_16, %c0_17] : memref<32x32xbf16, #tpu.memory_space<vmem>>, vector<32x32xbf16>
    %cst_18 = arith.constant dense<0.000000e+00> : vector<8x32xf32>
    %37 = tpu.matmul %35, %36, %cst_18 {dimension_numbers = #tpu.dot_dimension_numbers<[1], [0], [0], [1], [0, 0, 1, 1], [], []>} : vector<8x32xbf16>, vector<32x32xbf16>, vector<8x32xf32> -> vector<8x32xf32>
    %c0_19 = arith.constant 0 : index
    %c0_20 = arith.constant 0 : index
    %38 = vector.load %arg6[%c0_19, %c0_20] : memref<1x32xf32, #tpu.memory_space<vmem>>, vector<1x32xf32>
    %39 = vector.broadcast %38 : vector<1x32xf32> to vector<8x32xf32>
    %40 = arith.addf %37, %39 : vector<8x32xf32>
    %41 = arith.addf %1, %40 : vector<8x32xf32>
    %c0_21 = arith.constant 0 : index
    %c0_22 = arith.constant 0 : index
    %42 = vector.load %arg7[%c0_21, %c0_22] : memref<1x32xf32, #tpu.memory_space<vmem>>, vector<1x32xf32>
    %c0_23 = arith.constant 0 : index
    %c0_24 = arith.constant 0 : index
    %43 = vector.load %arg8[%c0_23, %c0_24] : memref<1x32xf32, #tpu.memory_space<vmem>>, vector<1x32xf32>
    %cst_25 = arith.constant dense<0.000000e+00> : vector<8xf32>
    %44 = vector.multi_reduction <add>, %41, %cst_25 [1] : vector<8x32xf32> to vector<8xf32>
    %45 = vector.shape_cast %44 : vector<8xf32> to vector<8x1xf32>
    %cst_26 = arith.constant 3.200000e+01 : f32
    %46 = vector.broadcast %cst_26 : f32 to vector<8x1xf32>
    %47 = arith.divf %45, %46 : vector<8x1xf32>
    %48 = vector.broadcast %47 : vector<8x1xf32> to vector<8x32xf32>
    %49 = arith.subf %41, %48 : vector<8x32xf32>
    %50 = arith.mulf %49, %49 : vector<8x32xf32>
    %cst_27 = arith.constant dense<0.000000e+00> : vector<8xf32>
    %51 = vector.multi_reduction <add>, %50, %cst_27 [1] : vector<8x32xf32> to vector<8xf32>
    %52 = vector.shape_cast %51 : vector<8xf32> to vector<8x1xf32>
    %cst_28 = arith.constant 3.200000e+01 : f32
    %53 = vector.broadcast %cst_28 : f32 to vector<8x1xf32>
    %54 = arith.divf %52, %53 : vector<8x1xf32>
    %55 = vector.broadcast %47 : vector<8x1xf32> to vector<8x32xf32>
    %56 = arith.subf %41, %55 : vector<8x32xf32>
    %cst_29 = arith.constant 9.99999996E-13 : f32
    %57 = vector.broadcast %cst_29 : f32 to vector<8x1xf32>
    %58 = arith.addf %54, %57 : vector<8x1xf32>
    %59 = math.rsqrt %58 : vector<8x1xf32>
    %60 = vector.broadcast %59 : vector<8x1xf32> to vector<8x32xf32>
    %61 = arith.mulf %56, %60 : vector<8x32xf32>
    %62 = vector.broadcast %42 : vector<1x32xf32> to vector<8x32xf32>
    %63 = arith.mulf %61, %62 : vector<8x32xf32>
    %64 = vector.broadcast %43 : vector<1x32xf32> to vector<8x32xf32>
    %65 = arith.addf %63, %64 : vector<8x32xf32>
    %66 = arith.truncf %65 : vector<8x32xf32> to vector<8x32xbf16>
    %c0_30 = arith.constant 0 : index
    %c0_31 = arith.constant 0 : index
    %67 = vector.load %arg9[%c0_30, %c0_31] : memref<32x128xbf16, #tpu.memory_space<vmem>>, vector<32x128xbf16>
    %cst_32 = arith.constant dense<0.000000e+00> : vector<8x128xf32>
    %68 = tpu.matmul %66, %67, %cst_32 {dimension_numbers = #tpu.dot_dimension_numbers<[1], [0], [0], [1], [0, 0, 1, 1], [], []>} : vector<8x32xbf16>, vector<32x128xbf16>, vector<8x128xf32> -> vector<8x128xf32>
    %c0_33 = arith.constant 0 : index
    %c0_34 = arith.constant 0 : index
    %69 = vector.load %arg10[%c0_33, %c0_34] : memref<1x128xf32, #tpu.memory_space<vmem>>, vector<1x128xf32>
    %70 = vector.broadcast %69 : vector<1x128xf32> to vector<8x128xf32>
    %71 = arith.addf %68, %70 : vector<8x128xf32>
    %72 = arith.mulf %71, %71 : vector<8x128xf32>
    %73 = arith.mulf %71, %72 : vector<8x128xf32>
    %cst_35 = arith.constant 4.471500e-02 : f32
    %74 = vector.broadcast %cst_35 : f32 to vector<8x128xf32>
    %75 = arith.mulf %74, %73 : vector<8x128xf32>
    %76 = arith.addf %71, %75 : vector<8x128xf32>
    %cst_36 = arith.constant 0.797884583 : f32
    %77 = vector.broadcast %cst_36 : f32 to vector<8x128xf32>
    %78 = arith.mulf %77, %76 : vector<8x128xf32>
    %79 = math.tanh %78 : vector<8x128xf32>
    %cst_37 = arith.constant 1.000000e+00 : f32
    %80 = vector.broadcast %cst_37 : f32 to vector<8x128xf32>
    %81 = arith.addf %80, %79 : vector<8x128xf32>
    %cst_38 = arith.constant 5.000000e-01 : f32
    %82 = vector.broadcast %cst_38 : f32 to vector<8x128xf32>
    %83 = arith.mulf %82, %81 : vector<8x128xf32>
    %84 = arith.mulf %71, %83 : vector<8x128xf32>
    %85 = arith.truncf %84 : vector<8x128xf32> to vector<8x128xbf16>
    %c0_39 = arith.constant 0 : index
    %c0_40 = arith.constant 0 : index
    %86 = vector.load %arg11[%c0_39, %c0_40] : memref<128x32xbf16, #tpu.memory_space<vmem>>, vector<128x32xbf16>
    %cst_41 = arith.constant dense<0.000000e+00> : vector<8x32xf32>
    %87 = tpu.matmul %85, %86, %cst_41 {dimension_numbers = #tpu.dot_dimension_numbers<[1], [0], [0], [1], [0, 0, 1, 1], [], []>} : vector<8x128xbf16>, vector<128x32xbf16>, vector<8x32xf32> -> vector<8x32xf32>
    %c0_42 = arith.constant 0 : index
    %c0_43 = arith.constant 0 : index
    %88 = vector.load %arg12[%c0_42, %c0_43] : memref<1x32xf32, #tpu.memory_space<vmem>>, vector<1x32xf32>
    %89 = vector.broadcast %88 : vector<1x32xf32> to vector<8x32xf32>
    %90 = arith.addf %87, %89 : vector<8x32xf32>
    %91 = arith.addf %65, %90 : vector<8x32xf32>
    %c0_44 = arith.constant 0 : index
    %c0_45 = arith.constant 0 : index
    %92 = vector.load %arg13[%c0_44, %c0_45] : memref<1x32xf32, #tpu.memory_space<vmem>>, vector<1x32xf32>
    %c0_46 = arith.constant 0 : index
    %c0_47 = arith.constant 0 : index
    %93 = vector.load %arg14[%c0_46, %c0_47] : memref<1x32xf32, #tpu.memory_space<vmem>>, vector<1x32xf32>
    %cst_48 = arith.constant dense<0.000000e+00> : vector<8xf32>
    %94 = vector.multi_reduction <add>, %91, %cst_48 [1] : vector<8x32xf32> to vector<8xf32>
    %95 = vector.shape_cast %94 : vector<8xf32> to vector<8x1xf32>
    %cst_49 = arith.constant 3.200000e+01 : f32
    %96 = vector.broadcast %cst_49 : f32 to vector<8x1xf32>
    %97 = arith.divf %95, %96 : vector<8x1xf32>
    %98 = vector.broadcast %97 : vector<8x1xf32> to vector<8x32xf32>
    %99 = arith.subf %91, %98 : vector<8x32xf32>
    %100 = arith.mulf %99, %99 : vector<8x32xf32>
    %cst_50 = arith.constant dense<0.000000e+00> : vector<8xf32>
    %101 = vector.multi_reduction <add>, %100, %cst_50 [1] : vector<8x32xf32> to vector<8xf32>
    %102 = vector.shape_cast %101 : vector<8xf32> to vector<8x1xf32>
    %cst_51 = arith.constant 3.200000e+01 : f32
    %103 = vector.broadcast %cst_51 : f32 to vector<8x1xf32>
    %104 = arith.divf %102, %103 : vector<8x1xf32>
    %105 = vector.broadcast %97 : vector<8x1xf32> to vector<8x32xf32>
    %106 = arith.subf %91, %105 : vector<8x32xf32>
    %cst_52 = arith.constant 9.99999996E-13 : f32
    %107 = vector.broadcast %cst_52 : f32 to vector<8x1xf32>
    %108 = arith.addf %104, %107 : vector<8x1xf32>
    %109 = math.rsqrt %108 : vector<8x1xf32>
    %110 = vector.broadcast %109 : vector<8x1xf32> to vector<8x32xf32>
    %111 = arith.mulf %106, %110 : vector<8x32xf32>
    %112 = vector.broadcast %92 : vector<1x32xf32> to vector<8x32xf32>
    %113 = arith.mulf %111, %112 : vector<8x32xf32>
    %114 = vector.broadcast %93 : vector<1x32xf32> to vector<8x32xf32>
    %115 = arith.addf %113, %114 : vector<8x32xf32>
    %116 = arith.truncf %115 : vector<8x32xf32> to vector<8x32xbf16>
    %c0_53 = arith.constant 0 : index
    %c0_54 = arith.constant 0 : index
    %117 = vector.load %arg17[%c0_53, %c0_54] : memref<32x128xbf16, #tpu.memory_space<vmem>>, vector<32x128xbf16>
    %cst_55 = arith.constant dense<0.000000e+00> : vector<8x128xf32>
    %118 = tpu.matmul %116, %117, %cst_55 {dimension_numbers = #tpu.dot_dimension_numbers<[1], [0], [0], [1], [0, 0, 1, 1], [], []>} : vector<8x32xbf16>, vector<32x128xbf16>, vector<8x128xf32> -> vector<8x128xf32>
    %c0_56 = arith.constant 0 : index
    %c0_57 = arith.constant 0 : index
    %119 = vector.load %arg18[%c0_56, %c0_57] : memref<1x128xf32, #tpu.memory_space<vmem>>, vector<1x128xf32>
    %120 = vector.broadcast %119 : vector<1x128xf32> to vector<8x128xf32>
    %121 = arith.addf %118, %120 : vector<8x128xf32>
    %c0_58 = arith.constant 0 : index
    %c0_59 = arith.constant 0 : index
    %c0_60 = arith.constant 0 : index
    %122 = vector.load %arg21[%c0_58, %c0_59, %c0_60] : memref<1x8x128xf32, #tpu.memory_space<vmem>>, vector<1x8x128xf32>
    %123 = vector.shape_cast %122 : vector<1x8x128xf32> to vector<8x128xf32>
    %124 = vector.shape_cast %121 : vector<8x128xf32> to vector<1x8x128xf32>
    tpu.vector_store %arg21[%c0_58, %c0_59, %c0_60], %124 {strides = array<i32>} : memref<1x8x128xf32, #tpu.memory_space<vmem>>, vector<1x8x128xf32>,
    %125 = vector.extract_strided_slice %115 {offsets = [0, 0], sizes = [1, 32], strides = [1, 1]} : vector<8x32xf32> to vector<1x32xf32>
    %126 = arith.truncf %125 : vector<1x32xf32> to vector<1x32xbf16>
    %c0_61 = arith.constant 0 : index
    %c0_62 = arith.constant 0 : index
    %127 = vector.load %arg15[%c0_61, %c0_62] : memref<32x32xbf16, #tpu.memory_space<vmem>>, vector<32x32xbf16>
    %cst_63 = arith.constant dense<0.000000e+00> : vector<1x32xf32>
    %128 = tpu.matmul %126, %127, %cst_63 {dimension_numbers = #tpu.dot_dimension_numbers<[1], [0], [0], [1], [0, 0, 1, 1], [], []>} : vector<1x32xbf16>, vector<32x32xbf16>, vector<1x32xf32> -> vector<1x32xf32>
    %c0_64 = arith.constant 0 : index
    %c0_65 = arith.constant 0 : index
    %129 = vector.load %arg16[%c0_64, %c0_65] : memref<1x32xf32, #tpu.memory_space<vmem>>, vector<1x32xf32>
    %130 = arith.addf %128, %129 : vector<1x32xf32>
    %131 = math.tanh %130 : vector<1x32xf32>
    %132 = arith.truncf %131 : vector<1x32xf32> to vector<1x32xbf16>
    %c0_66 = arith.constant 0 : index
    %c0_67 = arith.constant 0 : index
    %133 = vector.load %arg19[%c0_66, %c0_67] : memref<32x128xbf16, #tpu.memory_space<vmem>>, vector<32x128xbf16>
    %cst_68 = arith.constant dense<0.000000e+00> : vector<1x128xf32>
    %134 = tpu.matmul %132, %133, %cst_68 {dimension_numbers = #tpu.dot_dimension_numbers<[1], [0], [0], [1], [0, 0, 1, 1], [], []>} : vector<1x32xbf16>, vector<32x128xbf16>, vector<1x128xf32> -> vector<1x128xf32>
    %c0_69 = arith.constant 0 : index
    %c0_70 = arith.constant 0 : index
    %135 = vector.load %arg20[%c0_69, %c0_70] : memref<1x128xf32, #tpu.memory_space<vmem>>, vector<1x128xf32>
    %136 = arith.addf %134, %135 : vector<1x128xf32>
    %c0_71 = arith.constant 0 : index
    %c0_72 = arith.constant 0 : index
    %c0_73 = arith.constant 0 : index
    %137 = vector.load %arg22[%c0_71, %c0_72, %c0_73] : memref<1x1x128xf32, #tpu.memory_space<vmem>>, vector<1x1x128xf32>
    %138 = vector.shape_cast %137 : vector<1x1x128xf32> to vector<1x128xf32>
    %139 = vector.shape_cast %136 : vector<1x128xf32> to vector<1x1x128xf32>
    tpu.vector_store %arg22[%c0_71, %c0_72, %c0_73], %139 {strides = array<i32>} : memref<1x1x128xf32, #tpu.memory_space<vmem>>, vector<1x1x128xf32>,
    return
  }
  func.func @transform_0(%arg0: i32) -> (i32, i32, i32) {
    %c0_i32 = arith.constant 0 : i32
    %c0_i32_0 = arith.constant 0 : i32
    %c0_i32_1 = arith.constant 0 : i32
    return %arg0, %c0_i32, %c0_i32_0 : i32, i32, i32
  }
  func.func @transform_1(%arg0: i32) -> (i32, i32, i32) {
    %c0_i32 = arith.constant 0 : i32
    %c0_i32_0 = arith.constant 0 : i32
    %c0_i32_1 = arith.constant 0 : i32
    return %arg0, %c0_i32, %c0_i32_0 : i32, i32, i32
  }
  func.func @transform_2(%arg0: i32) -> (i32, i32) {
    %c0_i32 = arith.constant 0 : i32
    %c0_i32_0 = arith.constant 0 : i32
    %c0_i32_1 = arith.constant 0 : i32
    return %c0_i32, %c0_i32_0 : i32, i32
  }
  func.func @transform_3(%arg0: i32) -> (i32, i32) {
    %c0_i32 = arith.constant 0 : i32
    %c0_i32_0 = arith.constant 0 : i32
    %c0_i32_1 = arith.constant 0 : i32
    return %c0_i32, %c0_i32_0 : i32, i32
  }
  func.func @transform_4(%arg0: i32) -> (i32, i32) {
    %c0_i32 = arith.constant 0 : i32
    %c0_i32_0 = arith.constant 0 : i32
    %c0_i32_1 = arith.constant 0 : i32
    return %c0_i32, %c0_i32_0 : i32, i32
  }
  func.func @transform_5(%arg0: i32) -> (i32, i32) {
    %c0_i32 = arith.constant 0 : i32
    %c0_i32_0 = arith.constant 0 : i32
    %c0_i32_1 = arith.constant 0 : i32
    return %c0_i32, %c0_i32_0 : i32, i32
  }
  func.func @transform_6(%arg0: i32) -> (i32, i32) {
    %c0_i32 = arith.constant 0 : i32
    %c0_i32_0 = arith.constant 0 : i32
    %c0_i32_1 = arith.constant 0 : i32
    return %c0_i32, %c0_i32_0 : i32, i32
  }
  func.func @transform_7(%arg0: i32) -> (i32, i32) {
    %c0_i32 = arith.constant 0 : i32
    %c0_i32_0 = arith.constant 0 : i32
    %c0_i32_1 = arith.constant 0 : i32
    return %c0_i32, %c0_i32_0 : i32, i32
  }
  func.func @transform_8(%arg0: i32) -> (i32, i32) {
    %c0_i32 = arith.constant 0 : i32
    %c0_i32_0 = arith.constant 0 : i32
    %c0_i32_1 = arith.constant 0 : i32
    return %c0_i32, %c0_i32_0 : i32, i32
  }
  func.func @transform_9(%arg0: i32) -> (i32, i32) {
    %c0_i32 = arith.constant 0 : i32
    %c0_i32_0 = arith.constant 0 : i32
    %c0_i32_1 = arith.constant 0 : i32
    return %c0_i32, %c0_i32_0 : i32, i32
  }
  func.func @transform_10(%arg0: i32) -> (i32, i32) {
    %c0_i32 = arith.constant 0 : i32
    %c0_i32_0 = arith.constant 0 : i32
    %c0_i32_1 = arith.constant 0 : i32
    return %c0_i32, %c0_i32_0 : i32, i32
  }
  func.func @transform_11(%arg0: i32) -> (i32, i32) {
    %c0_i32 = arith.constant 0 : i32
    %c0_i32_0 = arith.constant 0 : i32
    %c0_i32_1 = arith.constant 0 : i32
    return %c0_i32, %c0_i32_0 : i32, i32
  }
  func.func @transform_12(%arg0: i32) -> (i32, i32) {
    %c0_i32 = arith.constant 0 : i32
    %c0_i32_0 = arith.constant 0 : i32
    %c0_i32_1 = arith.constant 0 : i32
    return %c0_i32, %c0_i32_0 : i32, i32
  }
  func.func @transform_13(%arg0: i32) -> (i32, i32) {
    %c0_i32 = arith.constant 0 : i32
    %c0_i32_0 = arith.constant 0 : i32
    %c0_i32_1 = arith.constant 0 : i32
    return %c0_i32, %c0_i32_0 : i32, i32
  }
  func.func @transform_14(%arg0: i32) -> (i32, i32) {
    %c0_i32 = arith.constant 0 : i32
    %c0_i32_0 = arith.constant 0 : i32
    %c0_i32_1 = arith.constant 0 : i32
    return %c0_i32, %c0_i32_0 : i32, i32
  }
  func.func @transform_15(%arg0: i32) -> (i32, i32) {
    %c0_i32 = arith.constant 0 : i32
    %c0_i32_0 = arith.constant 0 : i32
    %c0_i32_1 = arith.constant 0 : i32
    return %c0_i32, %c0_i32_0 : i32, i32
  }
  func.func @transform_16(%arg0: i32) -> (i32, i32) {
    %c0_i32 = arith.constant 0 : i32
    %c0_i32_0 = arith.constant 0 : i32
    %c0_i32_1 = arith.constant 0 : i32
    return %c0_i32, %c0_i32_0 : i32, i32
  }
  func.func @transform_17(%arg0: i32) -> (i32, i32) {
    %c0_i32 = arith.constant 0 : i32
    %c0_i32_0 = arith.constant 0 : i32
    %c0_i32_1 = arith.constant 0 : i32
    return %c0_i32, %c0_i32_0 : i32, i32
  }
  func.func @transform_18(%arg0: i32) -> (i32, i32) {
    %c0_i32 = arith.constant 0 : i32
    %c0_i32_0 = arith.constant 0 : i32
    %c0_i32_1 = arith.constant 0 : i32
    return %c0_i32, %c0_i32_0 : i32, i32
  }
  func.func @transform_19(%arg0: i32) -> (i32, i32) {
    %c0_i32 = arith.constant 0 : i32
    %c0_i32_0 = arith.constant 0 : i32
    %c0_i32_1 = arith.constant 0 : i32
    return %c0_i32, %c0_i32_0 : i32, i32
  }
  func.func @transform_20(%arg0: i32) -> (i32, i32, i32) {
    %c0_i32 = arith.constant 0 : i32
    %c0_i32_0 = arith.constant 0 : i32
    %c0_i32_1 = arith.constant 0 : i32
    return %arg0, %c0_i32, %c0_i32_0 : i32, i32, i32
  }
  func.func @transform_21(%arg0: i32) -> (i32, i32, i32) {
    %c0_i32 = arith.constant 0 : i32
    %c0_i32_0 = arith.constant 0 : i32
    %c0_i32_1 = arith.constant 0 : i32
    return %arg0, %c0_i32, %c0_i32_0 : i32, i32, i32
  }
}

</mosaic_0001>

<bundles_post_ra>
// kernel: hate_model_forward.1
= control target key start
LH: loop header
LB: loop body
LE: loop exit
PB: predicated region body
PF: predicated region fallthrough
CT: control target
= control target key end

     0   :  { %s1967_s0 = inlined_call_operand.vmem [shape: f32[2,8,32], index: 0, kind: input, shape index: {}]   ;;  %s1968_s1 = inlined_call_operand.vmem [shape: f32[2,1,8], index: 1, kind: input, shape index: {}]   ;;  %s1969_s2 = inlined_call_operand.vmem [shape: bf16[32,96], index: 2, kind: input, shape index: {}]   ;;  %s1970_s3 = inlined_call_operand.vmem [shape: f32[1,96], index: 3, kind: input, shape index: {}]   ;;  %s1971_s4 = inlined_call_operand.vmem [shape: bf16[32,32], index: 4, kind: input, shape index: {}]   ;;  %s1972_s5 = inlined_call_operand.vmem [shape: f32[1,32], index: 5, kind: input, shape index: {}]   ;;  %s1973_s6 = inlined_call_operand.vmem [shape: f32[1,32], index: 6, kind: input, shape index: {}]   ;;  %s1974_s7 = inlined_call_operand.vmem [shape: f32[1,32], index: 7, kind: input, shape index: {}]   ;;  %s1975_s8 = inlined_call_operand.vmem [shape: bf16[32,128], index: 8, kind: input, shape index: {}]   ;;  %s1976_s9 = inlined_call_operand.vmem [shape: f32[1,128], index: 9, kind: input, shape index: {}]   ;;  %s1977_s10 = inlined_call_operand.vmem [shape: bf16[128,32], index: 10, kind: input, shape index: {}]   ;;  %s1978_s11 = inlined_call_operand.vmem [shape: f32[1,32], index: 11, kind: input, shape index: {}]   ;;  %s1979_s12 = inlined_call_operand.vmem [shape: f32[1,32], index: 12, kind: input, shape index: {}]   ;;  %s1980_s13 = inlined_call_operand.vmem [shape: f32[1,32], index: 13, kind: input, shape index: {}]   ;;  %s1981_s14 = inlined_call_operand.vmem [shape: bf16[32,32], index: 14, kind: input, shape index: {}]   ;;  %s1982_s15 = inlined_call_operand.vmem [shape: f32[1,32], index: 15, kind: input, shape index: {}]   ;;  %s1983_s16 = inlined_call_operand.vmem [shape: bf16[32,128], index: 16, kind: input, shape index: {}]   ;;  %s1984_s17 = inlined_call_operand.vmem [shape: f32[1,128], index: 17, kind: input, shape index: {}]   ;;  %s1985_s18 = inlined_call_operand.vmem [shape: bf16[32,128], index: 18, kind: input, shape index: {}]   ;;  %s1986_s19 = inlined_call_operand.vmem [shape: f32[1,128], index: 19, kind: input, shape index: {}]   ;;  %s1987_s20 = inlined_call_operand.vmem [shape: f32[2,8,128], index: 20, kind: output, shape index: {0}]   ;;  %s1988_s21 = inlined_call_operand.vmem [shape: f32[2,1,128], index: 21, kind: output, shape index: {1}]  }
   0x1   :  { %1991 = sst [smem:[#allocation2_spill]] %s1967_s0 }
   0x2   :  { %1992 = sst [smem:[#allocation3_spill]] %s1968_s1 }
   0x3   :  { %1993 = sst [smem:[#allocation4_spill]] %s1969_s2  ;;  %s1782_s2 = smov 0  }
   0x4   :  { %1994 = sst [smem:[#allocation5_spill]] %s1970_s3 }
   0x5   :  { %1995 = sst [smem:[#allocation6_spill]] %s1971_s4 }
   0x6   :  { %1996 = sst [smem:[#allocation7_spill]] %s1972_s5 }
   0x7 LB: > { %s1457_s25 = sadd.s32 4294967295, %s1665_s2   ;;  %p1461_p0 = scmp.ge.s32.totalorder %s1665_s2, 1  ;;  %s1665_s2 = sphi %s1782_s2, %s32_s2  }
   0x8   : > { %p597_p1 = scmp.lt.s32.totalorder %s1665_s2, 3 }
   0xa   : > { %p598_p2 = pnand %p1461_p0, %p597_p1 }
   0xb   : > { %s1997_s3 = sld [smem:[#allocation4_spill]] (!%p598_p2)  ;;  %p661_p3 = scmp.lt.s32.totalorder (!%p598_p2), %s1457_s25, 1 }
   0xc   : > { %601 = sbr.rel (%p598_p2) target bundleno = 2709 (0xa95), region = 100  ;;  %s1998_s5 = sld [smem:[#allocation2_spill]] (!%p598_p2) }
   0xd   : > { %s1999_s24 = sld [smem:[#allocation5_spill]] (!%p598_p2)  ;;  %s1669_s26 = smov (!%p598_p2), 96  }
   0xe   : > { %s2000_s29 = sld [smem:[#allocation3_spill]] (!%p598_p2)  ;;  %s1671_s30 = smov (!%p598_p2), 64  }
   0xf   : > { %s2001_s23 = sld [smem:[#allocation6_spill]] (!%p598_p2) }
  0x10   : > { %s2002_s28 = sld [smem:[#allocation7_spill]] (!%p598_p2) }
  0x11   : > { %v1627_v0 = vld [vmem:[%s1997_s3 + $0x8] sm:$0xff]   ;;  %v1667_v1 = vmov 0.0   ;;  %v1628_v2 = vld [vmem:[%s1997_s3] sm:$0xff]   ;;  %vm1668_vm0 = vmmov 0   ;;  %s2004_s25 = smov (!%p661_p3, %s1457_s25), 1  ;;  %vm701_vm1 = vcmask 261120   ;;  %v750_v14 = vlaneseq }
  0x12   : > { %1534 = vmatprep.subr.bf16.mxu0 %v1667_v1  ;;  %1542 = vmatprep.subr.bf16.mxu1 %v1667_v1  ;;  %s1462_s0 = sshll.u32 %s2004_s25, 3  ;;  %v1670_v18 = vmov -1e+09   ;;  %vm804_vm3 = vcmask 64512   ;;  %vm822_vm4 = vcmask 1043456   ;;  %v1631_v58 = vld [vmem:[%s1975_s8 + $0x8] sm:$0xff]  }
  0x13   : > { %1535 = vmatpush3.bf16.msra.mxu0 %v1627_v0  ;;  %1538 = vmatprep.mubr.msk.bf16.mxu0 %vm1668_vm0, %v1667_v1  ;;  %s664_s22 = scalar_lea.vmem %s1998_s5, %s1462_s0  ;;  %v1464_v5 = vld [vmem:[%s1999_s24] ss:$0 sm:$0xff]  ;;  %v751_v16 = vshrl.u32 %v750_v14, 7  ;;  %s671_s27 = scalar_lea.vmem %s1987_s20, %s1462_s0 }
  0x14   : > { %1536 = vmatprep.subr.bf16.mxu0 %v1667_v1  ;;  %1544 = vmatprep.mubr.msk.bf16.mxu1 %vm1668_vm0, %v1667_v1  ;;  %v1812_v3 = vld [vmem:[%s664_s22] sm:$0xff]  ;;  %s667_s4 = scalar_lea.vmem %s2000_s29, %s2004_s25  ;;  %s674_s22 = scalar_lea.vmem %s1988_s21, %s2004_s25 }
  0x15   : > { %v677_v4 = vpack.c.bf16 %v1812_v3, %v1812_v3  ;;  %v746_v15 = vld [vmem:[%s667_s4] sm:$0x1]  ;;  %v752_v17 = vsub.s32 0, %v751_v16  ;;  %v1629_v32 = vld [vmem:[%s2001_s23 + $0x8] sm:$0xff]  }
  0x16   : > { %vm747_vm2 = vcmp.gt.f32.partialorder %v746_v15, 0.0  ;;  %v1630_v33 = vld [vmem:[%s2001_s23] sm:$0xff]  }
  0x17   : > { %1537 = vmatpush3.bf16.msra.mxu0 %v1628_v2  ;;  %v748_v19 = vsel %vm747_vm2, 0.0, %v1670_v18  ;;  %v1470_v45 = vld [vmem:[%s2002_s28] ss:$0 sm:$0xff] }
  0x18   : > { %1548 = vmatprep.subr.bf16.mxu0 %v1667_v1  ;;  %v753_v20 = vrot.slane %v748_v19, %v752_v17  ;;  %v1632_v59 = vld [vmem:[%s1975_s8] sm:$0xff]  }
  0x19   : > { %v1474_v0 = vld [vmem:[%s1973_s6] ss:$0 sm:$0xff] }
  0x1a   : > { %1539 = vmatmul.mubr.msk.bf16.vlgmr.msra.gmra.mxu0 %vm701_vm1, %v677_v4  ;;  %v1640_v14 = vld [vmem:[%s1977_s10] sm:$0xff]  }
  0x1b   : > { %1550 = vmatprep.mubr.msk.bf16.mxu0 %vm1668_vm0, %v1667_v1  ;;  %v1476_v15 = vld [vmem:[%s1976_s9] ss:$0 sm:$0xff] }
  0xda   : > { %v739_v6 = vpop.f32.mrf.mxu0 }
  0xdb   : > { %v740_v7 = vadd.f32 %v1464_v5, %v739_v6 }
  0xdc   : > { %v1540_v8 = vpop.f32.mrf.mxu0 }
  0xdd   : > { %v745_v9 = vpack.c.bf16 %v740_v7, %v740_v7  ;;  %v1633_v7 = vld [vmem:[%s1977_s10 + $0x38] sm:$0xff]   ;;  %v1634_v8 = vld [vmem:[%s1977_s10 + $0x30] sm:$0xff]  }
  0xde   : > { %v742_v10 = vpop.f32.mrf.mxu0 }
  0xdf   : > { %756 = vrot.lane.b32.xlu0 %v745_v9, %s1669_s26  ;;  %v1636_v10 = vld [vmem:[%s1977_s10 + $0x20] sm:$0xff]  }
  0xe0   : > { %v1541_v11 = vpop.f32.mrf.mxu0 }
  0xe1   : > { %v1637_v11 = vld [vmem:[%s1977_s10 + $0x18] sm:$0xff]  }
 0x151   : > { %v757_v12 = vpop.permute.xlu0 %756 }
 0x152   : > { %v762_v13 = vsel %vm701_vm1, %v757_v12, 0  ;;  %v1638_v12 = vld [vmem:[%s1977_s10 + $0x10] sm:$0xff]  }
 0x153   : > { %1543 = vmatpush3.bf16.xpose.msra.mxu1 %v762_v13  ;;  %v1639_v13 = vld [vmem:[%s1977_s10 + $0x8] sm:$0xff]  }
 0x154   : > { %1554 = vmatprep.subr.bf16.mxu1 %v1667_v1 }
 0x15a   : > { %1545 = vmatmul.mubr.msk.bf16.vlgmr.msra.gmra.mxu1 %vm701_vm1, %v745_v9 }
 0x15b   : > { %1558 = vmatprep.mubr.msk.bf16.mxu1 %vm1668_vm0, %v1667_v1  ;;  %1555 = vmatpush3.bf16.msra.mxu1 %v1629_v32 }
 0x15c   : > { %1556 = vmatprep.subr.bf16.mxu1 %v1667_v1 }
 0x15f   : > { %1557 = vmatpush3.bf16.msra.mxu1 %v1630_v33 }
 0x160   : > { %1570 = vmatprep.subr.bf16.mxu1 %v1667_v1 }
 0x21a   : > { %v798_v21 = vpop.f32.mrf.mxu1 }
 0x21b   : > { %v799_v22 = vadd.f32 %v798_v21, %v753_v20 }
 0x21c   : > { %v1546_v23 = vpop.f32.mrf.mxu1 }
 0x21d   : > { %v805_v24 = vsel %vm804_vm3, %v799_v22, -inf }
 0x21e   : > { %806 = vmax.xlane.f32.xlu0 %v805_v24  ;;  %v801_v25 = vpop.f32.mrf.mxu1 }
 0x220   : > { %v1547_v26 = vpop.f32.mrf.mxu1 }
 0x2a7   : > { %v807_v27 = vpop.xlane.xlu0 %806 }
 0x2a8   : > { %v808_v28 = vsub.f32 %v799_v22, %v807_v27 }
 0x2aa   : > { %v809_v29 = vmul.f32 1.442695, %v808_v28 }
 0x2ac   : > { %1647 = vpow2.f32 %v809_v29 }
 0x2b9   : > { %v1648_v30 = vpop.eup %1647 }
 0x2ba   : > { %v811_v31 = vsel %vm804_vm3, %v1648_v30, 0.0 }
 0x2bb   : > { %812 = vadd.xlane.f32.xlu1 %v811_v31  ;;  %v1480_v31 = vld [vmem:[%s1978_s11] ss:$0 sm:$0xff] }
 0x2cc   : > { %817 = vrot.lane.b32.xlu1 %v745_v9, %s1671_s30  ;;  %v1635_v9 = vld [vmem:[%s1977_s10 + $0x28] sm:$0xff]  }
 0x344   : > { %v813_v34 = vpop.xlane.xlu1 %812 }
 0x345   : > { %1649 = vrcp.f32 %v813_v34 }
 0x348   : > { %v818_v35 = vpop.permute.xlu1 %817 }
 0x349   : > { %v824_v36 = vsel %vm822_vm4, %v818_v35, 0 }
 0x34a   : > { %1549 = vmatpush3.bf16.msra.mxu0 %v824_v36 }
 0x34b   : > { %1562 = vmatprep.subr.bf16.mxu0 %v1667_v1 }
 0x352   : > { %v1650_v37 = vpop.eup %1649 }
 0x353   : > { %v815_v38 = vmul.f32 %v1650_v37, %v1648_v30 }
 0x355   : > { %v816_v39 = vpack.c.bf16 %v815_v38, %v815_v38 }
 0x357   : > { %1551 = vmatmul.mubr.msk.bf16.vlgmr.msra.gmra.mxu0 %vm804_vm3, %v816_v39 }
 0x358   : > { %1566 = vmatprep.mubr.msk.bf16.mxu0 %vm1668_vm0, %v1667_v1  ;;  %1563 = vmatpush3.bf16.msra.mxu0 %v1631_v58  ;;  %v1645_v58 = vld [vmem:[%s1985_s18 + $0x8] sm:$0xff]  }
 0x359   : > { %1564 = vmatprep.subr.bf16.mxu0 %v1667_v1 }
 0x35c   : > { %1565 = vmatpush3.bf16.msra.mxu0 %v1632_v59  ;;  %v1646_v59 = vld [vmem:[%s1985_s18] sm:$0xff]  }
 0x35d   : > { %1590 = vmatprep.subr.bf16.mxu0 %v1667_v1 }
 0x417   : > { %v860_v40 = vpop.f32.mrf.mxu0 }
 0x418   : > { %v866_v41 = vpack.c.bf16 %v860_v40, %v860_v40 }
 0x419   : > { %v1552_v42 = vpop.f32.mrf.mxu0 }
 0x41a   : > { %1559 = vmatmul.mubr.msk.bf16.vlgmr.msra.gmra.mxu1 %vm701_vm1, %v866_v41 }
 0x41b   : > { %v863_v43 = vpop.f32.mrf.mxu0  ;;  %1586 = vmatprep.mubr.msk.bf16.mxu1 %vm1668_vm0, %v1667_v1  ;;  %1571 = vmatpush3.bf16.msra.mxu1 %v1633_v7 }
 0x41c   : > { %1572 = vmatprep.subr.bf16.mxu1 %v1667_v1 }
 0x41d   : > { %v1553_v44 = vpop.f32.mrf.mxu0 }
 0x41e   : > { %v1641_v44 = vld [vmem:[%s1983_s16 + $0x8] sm:$0xff]  }
 0x41f   : > { %1573 = vmatpush3.bf16.msra.mxu1 %v1634_v8 }
 0x420   : > { %1574 = vmatprep.subr.bf16.mxu1 %v1667_v1 }
 0x423   : > { %1575 = vmatpush3.bf16.msra.mxu1 %v1635_v9 }
 0x424   : > { %1576 = vmatprep.subr.bf16.mxu1 %v1667_v1 }
 0x427   : > { %1577 = vmatpush3.bf16.msra.mxu1 %v1636_v10  ;;  %v1313_v10 = vld [vmem:[%s1986_s19] sm:$0x1] }
 0x428   : > { %1578 = vmatprep.subr.bf16.mxu1 %v1667_v1 }
 0x42b   : > { %1579 = vmatpush3.bf16.msra.mxu1 %v1637_v11 }
 0x42c   : > { %1580 = vmatprep.subr.bf16.mxu1 %v1667_v1 }
 0x42f   : > { %1581 = vmatpush3.bf16.msra.mxu1 %v1638_v12 }
 0x430   : > { %1582 = vmatprep.subr.bf16.mxu1 %v1667_v1 }
 0x433   : > { %1583 = vmatpush3.bf16.msra.mxu1 %v1639_v13 }
 0x434   : > { %1584 = vmatprep.subr.bf16.mxu1 %v1667_v1 }
 0x437   : > { %1585 = vmatpush3.bf16.msra.mxu1 %v1640_v14 }
 0x4da   : > { %v927_v46 = vpop.f32.mrf.mxu1 }
 0x4db   : > { %v928_v47 = vadd.f32 %v1470_v45, %v927_v46  ;;  %v1642_v45 = vld [vmem:[%s1983_s16] sm:$0xff]  }
 0x4dc   : > { %v1560_v48 = vpop.f32.mrf.mxu1 }
 0x4dd   : > { %v933_v49 = vadd.f32 %v928_v47, %v1812_v3  ;;  %v1475_v3 = vld [vmem:[%s1974_s7] ss:$0 sm:$0xff] }
 0x4de   : > { %v930_v50 = vpop.f32.mrf.mxu1 }
 0x4df   : > { %v936_v51 = vsel %vm701_vm1, %v933_v49, 0.0  ;;  %v1489_v50 = vld [vmem:[%s1979_s12] ss:$0 sm:$0xff] }
 0x4e0   : > { %937 = vadd.xlane.f32.xlu1 %v936_v51  ;;  %v1561_v52 = vpop.f32.mrf.mxu1 }
 0x4e1   : > { %v1490_v52 = vld [vmem:[%s1980_s13] ss:$0 sm:$0xff] }
 0x569   : > { %v938_v53 = vpop.xlane.xlu1 %937 }
 0x56a   : > { %v940_v54 = vmul.f32 0.03125, %v938_v53 }
 0x56c   : > { %v941_v55 = vsub.f32 %v933_v49, %v940_v54 }
 0x56e   : > { %v942_v56 = vmul.f32 %v941_v55, %v941_v55 }
 0x570   : > { %v943_v57 = vsel %vm701_vm1, %v942_v56, 0.0 }
 0x571   : > { %944 = vadd.xlane.f32.xlu0 %v943_v57  ;;  %v1644_v57 = vld [vmem:[%s1981_s14] sm:$0xff]  }
 0x5fa   : > { %v945_v60 = vpop.xlane.xlu0 %944 }
 0x5fb   : > { %v946_v61 = vmul.f32 0.03125, %v945_v60  ;;  %v1491_v60 = vld [vmem:[%s1984_s17] ss:$0 sm:$0xff] }
 0x5fd   : > { %v947_v62 = vadd.f32 1e-12, %v946_v61 }
 0x5ff   : > { %1651 = vrsqrt.f32 %v947_v62 }
 0x60c   : > { %v1652_v63 = vpop.eup %1651 }
 0x60d   : > { %v949_v2 = vmul.f32 %v1652_v63, %v941_v55  ;;  %v1643_v55 = vld [vmem:[%s1981_s14 + $0x8] sm:$0xff]  }
 0x60f   : > { %v956_v4 = vmul.f32 %v1474_v0, %v949_v2  ;;  %v1254_v2 = vld [vmem:[%s1982_s15] sm:$0x1] }
 0x611   : > { %v963_v5 = vadd.f32 %v1475_v3, %v956_v4 }
 0x613   : > { %v964_v6 = vpack.c.bf16 %v963_v5, %v963_v5 }
 0x615   : > { %1567 = vmatmul.mubr.msk.bf16.vlgmr.msra.gmra.mxu0 %vm701_vm1, %v964_v6 }
 0x616   : > { %1594 = vmatprep.mubr.msk.bf16.mxu0 %vm1668_vm0, %v1667_v1  ;;  %1591 = vmatpush3.bf16.msra.mxu0 %v1641_v44 }
 0x617   : > { %1592 = vmatprep.subr.bf16.mxu0 %v1667_v1 }
 0x61a   : > { %1593 = vmatpush3.bf16.msra.mxu0 %v1642_v45 }
 0x61b   : > { %1598 = vmatprep.subr.bf16.mxu0 %v1667_v1 }
 0x6d5   : > { %v1025_v16 = vpop.f32.mrf.mxu0 }
 0x6d6   : > { %v1026_v17 = vadd.f32 %v1476_v15, %v1025_v16 }
 0x6d7   : > { %v1568_v18 = vpop.f32.mrf.mxu0 }
 0x6d8   : > { %v1031_v19 = vmul.f32 %v1026_v17, %v1026_v17 }
 0x6d9   : > { %v1028_v20 = vpop.f32.mrf.mxu0 }
 0x6da   : > { %v1032_v21 = vmul.f32 %v1031_v19, %v1026_v17 }
 0x6db   : > { %v1569_v22 = vpop.f32.mrf.mxu0 }
 0x6dc   : > { %v1033_v23 = vmul.f32 0.044715, %v1032_v21 }
 0x6de   : > { %v1034_v24 = vadd.f32 %v1033_v23, %v1026_v17 }
 0x6e0   : > { %v1035_v25 = vmul.f32 0.7978846, %v1034_v24 }
 0x6e2   : > { %1653 = vtanh.f32 %v1035_v25 }
 0x6ef   : > { %v1654_v26 = vpop.eup %1653 }
 0x6f0   : > { %v1037_v27 = vadd.f32 1.0, %v1654_v26 }
 0x6f2   : > { %v1038_v28 = vmul.f32 0.5, %v1037_v27 }
 0x6f4   : > { %v1039_v29 = vmul.f32 %v1038_v28, %v1026_v17 }
 0x6f6   : > { %v1040_v30 = vpack.c.bf16 %v1039_v29, %v1039_v29 }
 0x6f8   : > { %1587 = vmatmul.mubr.bf16.vlgmr.msra.gmra.mxu1 %v1040_v30 }
 0x7b8   : > { %v1146_v32 = vpop.f32.mrf.mxu1 }
 0x7b9   : > { %v1147_v33 = vadd.f32 %v1480_v31, %v1146_v32 }
 0x7ba   : > { %v1588_v34 = vpop.f32.mrf.mxu1 }
 0x7bb   : > { %v1152_v35 = vadd.f32 %v1147_v33, %v963_v5 }
 0x7bc   : > { %v1149_v36 = vpop.f32.mrf.mxu1 }
 0x7bd   : > { %v1155_v37 = vsel %vm701_vm1, %v1152_v35, 0.0 }
 0x7be   : > { %1156 = vadd.xlane.f32.xlu0 %v1155_v37  ;;  %v1589_v38 = vpop.f32.mrf.mxu1 }
 0x847   : > { %v1157_v39 = vpop.xlane.xlu0 %1156 }
 0x848   : > { %v1158_v40 = vmul.f32 0.03125, %v1157_v39 }
 0x84a   : > { %v1159_v41 = vsub.f32 %v1152_v35, %v1158_v40 }
 0x84c   : > { %v1160_v42 = vmul.f32 %v1159_v41, %v1159_v41 }
 0x84e   : > { %v1161_v43 = vsel %vm701_vm1, %v1160_v42, 0.0 }
 0x84f   : > { %1162 = vadd.xlane.f32.xlu0 %v1161_v43 }
 0x8d8   : > { %v1163_v46 = vpop.xlane.xlu0 %1162 }
 0x8d9   : > { %v1164_v47 = vmul.f32 0.03125, %v1163_v46 }
 0x8db   : > { %v1165_v48 = vadd.f32 1e-12, %v1164_v47 }
 0x8dd   : > { %1655 = vrsqrt.f32 %v1165_v48 }
 0x8ea   : > { %v1656_v49 = vpop.eup %1655 }
 0x8eb   : > { %v1167_v51 = vmul.f32 %v1656_v49, %v1159_v41 }
 0x8ed   : > { %v1174_v53 = vmul.f32 %v1489_v50, %v1167_v51 }
 0x8ef   : > { %v1181_v54 = vadd.f32 %v1490_v52, %v1174_v53 }
 0x8f1   : > { %v1182_v56 = vpack.c.bf16 %v1181_v54, %v1181_v54 }
 0x8f3   : > { %1595 = vmatmul.mubr.msk.bf16.vlgmr.msra.gmra.mxu0 %vm701_vm1, %v1182_v56 }
 0x8f4   : > { %1599 = vmatpush3.bf16.msra.mxu0 %v1643_v55  ;;  %1602 = vmatprep.mubr.msk.bf16.mxu0 %vm1668_vm0, %v1667_v1 }
 0x8f5   : > { %1600 = vmatprep.subr.bf16.mxu0 %v1667_v1 }
 0x8f8   : > { %1601 = vmatpush3.bf16.msra.mxu0 %v1644_v57 }
 0x8f9   : > { %1606 = vmatprep.subr.bf16.mxu0 %v1667_v1 }
 0x8fb   : > { %1603 = vmatmul.mubr.msk.bf16.vlgmr.msra.gmra.mxu0 %vm701_vm1, %v1182_v56 }
 0x8fc   : > { %1610 = vmatprep.mubr.msk.bf16.mxu0 %vm1668_vm0, %v1667_v1  ;;  %1607 = vmatpush3.bf16.msra.mxu0 %v1645_v58 }
 0x8fd   : > { %1608 = vmatprep.subr.bf16.mxu0 %v1667_v1 }
 0x900   : > { %1609 = vmatpush3.bf16.msra.mxu0 %v1646_v59 }
 0x9b3   : > { %v1243_v61 = vpop.f32.mrf.mxu0 }
 0x9b4   : > { %v1244_v62 = vadd.f32 %v1491_v60, %v1243_v61 }
 0x9b5   : > { %v1596_v63 = vpop.f32.mrf.mxu0 }
 0x9b6   : > { %1249 = vst [vmem:[%s671_s27] sm:$0xff] %v1244_v62 }
 0x9b7   : > { %v1246_v1 = vpop.f32.mrf.mxu0 }
 0x9b9   : > { %v1597_v0 = vpop.f32.mrf.mxu0 }
 0x9bb   : > { %v1301_v3 = vpop.f32.mrf.mxu0 }
 0x9bc   : > { %v1302_v4 = vadd.f32 %v1301_v3, %v1254_v2 }
 0x9bd   : > { %v1604_v5 = vpop.f32.mrf.mxu0 }
 0x9be   : > { %1657 = vtanh.f32 %v1302_v4 }
 0x9bf   : > { %v1304_v6 = vpop.f32.mrf.mxu0 }
 0x9c1   : > { %v1605_v7 = vpop.f32.mrf.mxu0 }
 0x9cb   : > { %v1658_v8 = vpop.eup %1657 }
 0x9cc   : > { %v1308_v9 = vpack.c.bf16 %v1658_v8, %v1658_v8 }
 0x9ce   : > { %1611 = vmatmul.mubr.msk.bf16.vlgmr.msra.gmra.mxu0 %vm701_vm1, %v1308_v9 }
 0xa8e   : > { %v1363_v11 = vpop.f32.mrf.mxu0 }
 0xa8f   : > { %v1364_v12 = vadd.f32 %v1363_v11, %v1313_v10 }
 0xa90   : > { %v1612_v13 = vpop.f32.mrf.mxu0 }
 0xa91   : > { %1369 = vst [vmem:[%s674_s22] sm:$0x1] %v1364_v12 }
 0xa92   : > { %v1366_v14 = vpop.f32.mrf.mxu0 }
 0xa94   : > { %v1613_v15 = vpop.f32.mrf.mxu0 }
 0xa95 PF: > { %s32_s2 = sadd.s32 1, %s1665_s2  }
 0xa96   : > { %p29_p4 = scmp.ge.s32.totalorder %s32_s2, 4  }
 0xa98   :  { %31 = sbr.rel (!%p29_p4) target bundleno = 7 (0x7), region = 145 }

</bundles_post_ra>
